<compile_context>
chip_gen: v7x
topology: tpu7x:2x2x1
jax: 0.10.0
libtpu: 0.0.40
codegen_flags: <defaults>
</compile_context>

<pallas_src>
import functools

import jax
import jax.numpy as jnp
from jax.experimental import pallas as pl
from jax.experimental.pallas import tpu as pltpu


def _round_up(x, m):
    return (x + m - 1) // m * m


# ---------------- kernel 1: fused dilated 3x3 conv + BN partial stats ----------------

def _conv_bn_stats_kernel(x_ref, w_ref, o_ref, sum_ref, ssq_ref, *,
                          tm, bases, wp, w_out, r, m_img):
    """
    x_ref   : (C_pad, blk_w)       bf16 channel-major flat slab block (with halo)
    w_ref   : (out_c_pad, 9*C_pad) bf16 fused tap-major weights
    o_ref   : (out_c_pad, tm)      bf16 conv output block (channel-major, lane-dense)
    sum_ref : (out_c_pad, 1)       f32 per-image BN partial sum   (accumulated over j)
    ssq_ref : (out_c_pad, 1)       f32 per-image BN partial sumsq (accumulated over j)
    """
    j = pl.program_id(1)

    # Stack the 9 statically-offset tap windows along K and issue ONE MXU
    # matmul with K = 9*C_pad (no f32 scratch, no per-tap recasts).
    xk = jnp.concatenate([x_ref[:, b:b + tm] for b in bases], axis=0)
    acc = jnp.dot(w_ref[...], xk, preferred_element_type=jnp.float32)  # (out_c_pad, tm)

    o_ref[...] = acc.astype(o_ref.dtype)

    # Validity mask generated in-kernel: real output pixel vs padded column / pad rows.
    m_idx = j * tm + jax.lax.broadcasted_iota(jnp.int32, (1, tm), 1)
    col = jax.lax.rem(m_idx, wp)
    valid = (col >= r) & (col < r + w_out) & (m_idx < m_img)
    masked = jnp.where(valid, acc, 0.0)

    part_sum = jnp.sum(masked, axis=1, keepdims=True)        # (out_c_pad, 1)
    part_ssq = jnp.sum(masked * acc, axis=1, keepdims=True)

    @pl.when(j == 0)
    def _():
        sum_ref[...] = jnp.zeros_like(sum_ref)
        ssq_ref[...] = jnp.zeros_like(ssq_ref)

    sum_ref[...] += part_sum
    ssq_ref[...] += part_ssq


# ---------------- kernel 2: BN affine + ReLU, writes NCHW output directly ----------------

def _bn_relu_kernel(x_ref, scale_ref, shift_ref, o_ref, *, out_c, r, w_out):
    # x_ref: (out_c_pad, th, Wp) bf16 ; scale/shift: (out_c, 1, 1) f32 ; o_ref: (out_c, th, W) f32
    x = x_ref[:out_c, :, r:r + w_out].astype(jnp.float32)
    o_ref[...] = jnp.maximum(x * scale_ref[...] + shift_ref[...], 0.0)


# ---------------- tile pickers ----------------

def _pick_tm(m_img, max_tm=2048):
    """Row tile over the flat spatial dim. Returns (tm, M_pad)."""
    if m_img <= max_tm:
        return m_img, m_img                      # single full block per image
    t = max_tm - (max_tm % 128)
    while t >= 128:
        if m_img % t == 0:
            return t, m_img                      # lane-aligned exact divisor
        t -= 128
    # Awkward M: pad M up to a multiple of max_tm; kernel 2 drops the pad.
    return max_tm, _round_up(m_img, max_tm)


def _pick_th(h, max_th=64):
    if h <= max_th:
        return h
    t = max_th - (max_th % 8)
    while t >= 8:
        if h % t == 0:
            return t
        t -= 8
    return h


# ---------------- wrapper ----------------

@functools.partial(jax.jit, static_argnames=("rate",))
def conv_block_forward(x_nchw, weight, bias, gamma, beta, *, rate=1, eps=1e-5):
    """Equivalent of conv_block.forward(x) (train-mode BN batch statistics)."""
    del bias  # cancels exactly through train-mode BatchNorm mean subtraction
    # TODO(synk): BatchNorm running_mean/var buffer updates (training-time
    # bookkeeping, not part of the forward output) are not emulated.

    N, C, H, W = x_nchw.shape
    out_c = weight.shape[0]
    r = rate
    Hp, Wp = H + 2 * r, W + 2 * r
    M_img = H * Wp

    C_pad = _round_up(C, 16)        # bf16 sublane tile -> tile-aligned tap concat
    out_c_pad = _round_up(out_c, 8)

    tm, M_pad = _pick_tm(M_img)
    nJ = M_pad // tm
    halo = 2 * r * Wp + 2 * r
    blk_w = _round_up(tm + halo, 128)

    # static tap offsets into the (leading-r-padded) flat slab: base = kh*r*Wp + kw*r
    bases = tuple(kh * r * Wp + kw * r for kh in range(3) for kw in range(3))

    # ---- glue: channel-major flat padded slab (no NCHW->NHWC transpose) ----
    xp = jnp.pad(x_nchw, ((0, 0), (0, 0), (r, r), (r, r)))          # (N,C,Hp,Wp)
    xf = xp.reshape(N, C, Hp * Wp)
    xf = jnp.pad(xf, ((0, 0), (0, C_pad - C), (0, 0)))
    R_total = max((nJ - 1) * tm + blk_w, r + Hp * Wp)
    xf = jnp.pad(xf, ((0, 0), (0, 0), (r, R_total - r - Hp * Wp)))
    xf = xf.astype(jnp.bfloat16)                                     # (N, C_pad, R_total)

    if nJ == 1:
        x_blk = xf[:, None, :, :blk_w]                               # (N,1,C_pad,blk_w)
    else:
        # wrapper-side halo duplication so all in-kernel lane slices are static
        idx = (jnp.arange(nJ) * tm)[:, None] + jnp.arange(blk_w)[None, :]
        x_blk = jnp.transpose(xf[:, :, idx], (0, 2, 1, 3))           # (N,nJ,C_pad,blk_w)

    # fused weights: (out_c, C, 3, 3) -> (out_c_pad, 9*C_pad), tap-major K
    wf = jnp.transpose(weight, (0, 2, 3, 1))                         # (out_c,3,3,C)
    wf = jnp.pad(wf, ((0, out_c_pad - out_c), (0, 0), (0, 0), (0, C_pad - C)))
    wf = wf.reshape(out_c_pad, 9 * C_pad).astype(jnp.bfloat16)

    # ---- kernel 1: fused conv + BN partial stats, grid (image, row-block) ----
    kern1 = functools.partial(_conv_bn_stats_kernel, tm=tm, bases=bases,
                              wp=Wp, w_out=W, r=r, m_img=M_img)
    conv_out, psum, pssq = pl.pallas_call(
        kern1,
        grid=(N, nJ),
        in_specs=[
            pl.BlockSpec((None, None, C_pad, blk_w), lambda n, j: (n, j, 0, 0)),
            pl.BlockSpec((out_c_pad, 9 * C_pad), lambda n, j: (0, 0)),
        ],
        out_specs=[
            pl.BlockSpec((None, out_c_pad, tm), lambda n, j: (n, 0, j)),
            pl.BlockSpec((None, out_c_pad, 1), lambda n, j: (n, 0, 0)),
            pl.BlockSpec((None, out_c_pad, 1), lambda n, j: (n, 0, 0)),
        ],
        out_shape=(
            jax.ShapeDtypeStruct((N, out_c_pad, M_pad), jnp.bfloat16),
            jax.ShapeDtypeStruct((N, out_c_pad, 1), jnp.float32),
            jax.ShapeDtypeStruct((N, out_c_pad, 1), jnp.float32),
        ),
        compiler_params=pltpu.CompilerParams(
            dimension_semantics=("parallel", "arbitrary"),
            vmem_limit_bytes=32 * 1024 * 1024),
    )(x_blk, wf)

    # ---- BN batch statistics (tiny finalize in XLA) ----
    n_valid = jnp.float32(N * H * W)
    ch_sum = jnp.sum(psum[:, :out_c, 0], axis=0)
    ch_ssq = jnp.sum(pssq[:, :out_c, 0], axis=0)
    mean = ch_sum / n_valid
    var = jnp.maximum(ch_ssq / n_valid - mean * mean, 0.0)          # biased, as PyTorch
    scale = gamma.astype(jnp.float32) * jax.lax.rsqrt(var + eps)
    shift = beta.astype(jnp.float32) - mean * scale
    scale3 = scale.reshape(out_c, 1, 1)
    shift3 = shift.reshape(out_c, 1, 1)

    # ---- kernel 2: BN + ReLU; drops padded columns and writes NCHW directly ----
    if M_pad == M_img:
        conv3 = conv_out.reshape(N, out_c_pad, H, Wp)                # free (contiguous) reshape
    else:
        conv3 = conv_out[:, :, :M_img].reshape(N, out_c_pad, H, Wp)

    th = _pick_th(H)
    nH = H // th
    kern2 = functools.partial(_bn_relu_kernel, out_c=out_c, r=r, w_out=W)
    y = pl.pallas_call(
        kern2,
        grid=(N, nH),
        in_specs=[
            pl.BlockSpec((None, out_c_pad, th, Wp), lambda n, h: (n, 0, h, 0)),
            pl.BlockSpec((out_c, 1, 1), lambda n, h: (0, 0, 0)),
            pl.BlockSpec((out_c, 1, 1), lambda n, h: (0, 0, 0)),
        ],
        out_specs=pl.BlockSpec((None, out_c, th, W), lambda n, h: (n, 0, h, 0)),
        out_shape=jax.ShapeDtypeStruct((N, out_c, H, W), jnp.float32),
        compiler_params=pltpu.CompilerParams(
            dimension_semantics=("parallel", "parallel"),
            vmem_limit_bytes=32 * 1024 * 1024),
    )(conv3, scale3, shift3)

    return y


# ---------------- pure-JAX reference (module semantics; f32 conv output) ----------------

def _reference(x_nchw, weight, bias, gamma, beta, *, rate=1, eps=1e-5):
    y = jax.lax.conv_general_dilated(
        x_nchw.astype(jnp.bfloat16), weight.astype(jnp.bfloat16),
        window_strides=(1, 1),
        padding=[(rate, rate), (rate, rate)],
        rhs_dilation=(rate, rate),
        dimension_numbers=("NCHW", "OIHW", "NCHW"),
        preferred_element_type=jnp.float32,
    ) + bias.reshape(1, -1, 1, 1).astype(jnp.float32)
    mean = jnp.mean(y, axis=(0, 2, 3), keepdims=True)
    var = jnp.mean(jnp.square(y - mean), axis=(0, 2, 3), keepdims=True)
    yn = (y - mean) * jax.lax.rsqrt(var + eps)
    yn = yn * gamma.reshape(1, -1, 1, 1) + beta.reshape(1, -1, 1, 1)
    return jnp.maximum(yn, 0.0)


if __name__ == "__main__":
    # Small shapes consistent with the module: N=2, in_c=4, out_c=8, H=W=16, rate=1
    N, in_c, out_c, H, W, rate = 2, 4, 8, 16, 16, 1

    key = jax.random.PRNGKey(0)
    kx, kw_, kb, kg, kbeta = jax.random.split(key, 5)
    x = jax.random.normal(kx, (N, in_c, H, W), dtype=jnp.float32)
    weight = 0.1 * jax.random.normal(kw_, (out_c, in_c, 3, 3), dtype=jnp.float32)
    bias = 0.1 * jax.random.normal(kb, (out_c,), dtype=jnp.float32)
    gamma = 1.0 + 0.1 * jax.random.normal(kg, (out_c,), dtype=jnp.float32)
    beta = 0.1 * jax.random.normal(kbeta, (out_c,), dtype=jnp.float32)

    out = conv_block_forward(x, weight, bias, gamma, beta, rate=rate)
    out = jax.block_until_ready(out)

    ref = _reference(x, weight, bias, gamma, beta, rate=rate)
    assert out.shape == (N, out_c, H, W)
    max_err = float(jnp.max(jnp.abs(out - ref)))
    # Tolerance accounts for the intentional bf16 storage of conv_out (perf review item).
    assert jnp.allclose(out, ref, atol=2e-2, rtol=2e-2), f"mismatch: {max_err}"

    print("KERNEL_OK")
</pallas_src>

<mosaic_0001>
module attributes {stable_mosaic.version = 11 : i64} {
  func.func @_conv_bn_stats_kernel(%arg0: i32, %arg1: i32, %arg2: memref<1x1x16x384xbf16, #tpu.memory_space<vmem>>, %arg3: memref<8x144xbf16, #tpu.memory_space<vmem>>, %arg4: memref<1x8x288xbf16, #tpu.memory_space<vmem>>, %arg5: memref<1x8x1xf32, #tpu.memory_space<vmem>>, %arg6: memref<1x8x1xf32, #tpu.memory_space<vmem>>) attributes {dimension_semantics = [#tpu.dimension_semantics<parallel>, #tpu.dimension_semantics<arbitrary>], iteration_bounds = array<i64: 2, 1>, scalar_prefetch = 0 : i64, scratch_operands = 0 : i64, tpu.core_type = #tpu.core_type<tc>, window_params = [{transform_indices = @transform_0, window_bounds = array<i64: 1, 1, 16, 384>}, {pipeline_mode = #tpu.pipeline_mode<synchronous>, transform_indices = @transform_1, window_bounds = array<i64: 8, 144>}, {transform_indices = @transform_2, window_bounds = array<i64: 1, 8, 288>}, {transform_indices = @transform_3, window_bounds = array<i64: 1, 8, 1>}, {transform_indices = @transform_4, window_bounds = array<i64: 1, 8, 1>}]} {
    %c0 = arith.constant 0 : index
    %c0_0 = arith.constant 0 : index
    %c0_1 = arith.constant 0 : index
    %c0_2 = arith.constant 0 : index
    %0 = vector.load %arg2[%c0, %c0_0, %c0_1, %c0_2] : memref<1x1x16x384xbf16, #tpu.memory_space<vmem>>, vector<1x1x16x288xbf16>
    %1 = vector.shape_cast %0 : vector<1x1x16x288xbf16> to vector<16x288xbf16>
    %c0_3 = arith.constant 0 : index
    %c0_4 = arith.constant 0 : index
    %c0_5 = arith.constant 0 : index
    %c1 = arith.constant 1 : index
    %2 = vector.load %arg2[%c0_3, %c0_4, %c0_5, %c1] : memref<1x1x16x384xbf16, #tpu.memory_space<vmem>>, vector<1x1x16x288xbf16>
    %3 = vector.shape_cast %2 : vector<1x1x16x288xbf16> to vector<16x288xbf16>
    %c0_6 = arith.constant 0 : index
    %c0_7 = arith.constant 0 : index
    %c0_8 = arith.constant 0 : index
    %c2 = arith.constant 2 : index
    %4 = vector.load %arg2[%c0_6, %c0_7, %c0_8, %c2] : memref<1x1x16x384xbf16, #tpu.memory_space<vmem>>, vector<1x1x16x288xbf16>
    %5 = vector.shape_cast %4 : vector<1x1x16x288xbf16> to vector<16x288xbf16>
    %c0_9 = arith.constant 0 : index
    %c0_10 = arith.constant 0 : index
    %c0_11 = arith.constant 0 : index
    %c18 = arith.constant 18 : index
    %6 = vector.load %arg2[%c0_9, %c0_10, %c0_11, %c18] : memref<1x1x16x384xbf16, #tpu.memory_space<vmem>>, vector<1x1x16x288xbf16>
    %7 = vector.shape_cast %6 : vector<1x1x16x288xbf16> to vector<16x288xbf16>
    %c0_12 = arith.constant 0 : index
    %c0_13 = arith.constant 0 : index
    %c0_14 = arith.constant 0 : index
    %c19 = arith.constant 19 : index
    %8 = vector.load %arg2[%c0_12, %c0_13, %c0_14, %c19] : memref<1x1x16x384xbf16, #tpu.memory_space<vmem>>, vector<1x1x16x288xbf16>
    %9 = vector.shape_cast %8 : vector<1x1x16x288xbf16> to vector<16x288xbf16>
    %c0_15 = arith.constant 0 : index
    %c0_16 = arith.constant 0 : index
    %c0_17 = arith.constant 0 : index
    %c20 = arith.constant 20 : index
    %10 = vector.load %arg2[%c0_15, %c0_16, %c0_17, %c20] : memref<1x1x16x384xbf16, #tpu.memory_space<vmem>>, vector<1x1x16x288xbf16>
    %11 = vector.shape_cast %10 : vector<1x1x16x288xbf16> to vector<16x288xbf16>
    %c0_18 = arith.constant 0 : index
    %c0_19 = arith.constant 0 : index
    %c0_20 = arith.constant 0 : index
    %c36 = arith.constant 36 : index
    %12 = vector.load %arg2[%c0_18, %c0_19, %c0_20, %c36] : memref<1x1x16x384xbf16, #tpu.memory_space<vmem>>, vector<1x1x16x288xbf16>
    %13 = vector.shape_cast %12 : vector<1x1x16x288xbf16> to vector<16x288xbf16>
    %c0_21 = arith.constant 0 : index
    %c0_22 = arith.constant 0 : index
    %c0_23 = arith.constant 0 : index
    %c37 = arith.constant 37 : index
    %14 = vector.load %arg2[%c0_21, %c0_22, %c0_23, %c37] : memref<1x1x16x384xbf16, #tpu.memory_space<vmem>>, vector<1x1x16x288xbf16>
    %15 = vector.shape_cast %14 : vector<1x1x16x288xbf16> to vector<16x288xbf16>
    %c0_24 = arith.constant 0 : index
    %c0_25 = arith.constant 0 : index
    %c0_26 = arith.constant 0 : index
    %c38 = arith.constant 38 : index
    %16 = vector.load %arg2[%c0_24, %c0_25, %c0_26, %c38] : memref<1x1x16x384xbf16, #tpu.memory_space<vmem>>, vector<1x1x16x288xbf16>
    %17 = vector.shape_cast %16 : vector<1x1x16x288xbf16> to vector<16x288xbf16>
    %18 = tpu.concatenate %1, %3, %5, %7, %9, %11, %13, %15, %17 in 0 : vector<16x288xbf16>, vector<16x288xbf16>, vector<16x288xbf16>, vector<16x288xbf16>, vector<16x288xbf16>, vector<16x288xbf16>, vector<16x288xbf16>, vector<16x288xbf16>, vector<16x288xbf16> -> vector<144x288xbf16>
    %c0_27 = arith.constant 0 : index
    %c0_28 = arith.constant 0 : index
    %19 = vector.load %arg3[%c0_27, %c0_28] : memref<8x144xbf16, #tpu.memory_space<vmem>>, vector<8x144xbf16>
    %cst = arith.constant dense<0.000000e+00> : vector<8x288xf32>
    %20 = tpu.matmul %19, %18, %cst {dimension_numbers = #tpu.dot_dimension_numbers<[1], [0], [0], [1], [0, 0, 1, 1], [], []>} : vector<8x144xbf16>, vector<144x288xbf16>, vector<8x288xf32> -> vector<8x288xf32>
    %21 = arith.truncf %20 : vector<8x288xf32> to vector<8x288xbf16>
    %c0_29 = arith.constant 0 : index
    %c0_30 = arith.constant 0 : index
    %c0_31 = arith.constant 0 : index
    %22 = vector.load %arg4[%c0_29, %c0_30, %c0_31] : memref<1x8x288xbf16, #tpu.memory_space<vmem>>, vector<1x8x288xbf16>
    %23 = vector.shape_cast %22 : vector<1x8x288xbf16> to vector<8x288xbf16>
    %24 = vector.shape_cast %21 : vector<8x288xbf16> to vector<1x8x288xbf16>
    tpu.vector_store %arg4[%c0_29, %c0_30, %c0_31], %24 {strides = array<i32>} : memref<1x8x288xbf16, #tpu.memory_space<vmem>>, vector<1x8x288xbf16>,
    %c288_i32 = arith.constant 288 : i32
    %25 = arith.muli %arg1, %c288_i32 : i32
    %26 = tpu.iota {dimensions = array<i32: 1>} : vector<1x288xi32>
    %27 = vector.broadcast %25 : i32 to vector<1x288xi32>
    %28 = arith.addi %27, %26 : vector<1x288xi32>
    %c18_i32 = arith.constant 18 : i32
    %29 = vector.broadcast %c18_i32 : i32 to vector<1x288xi32>
    %30 = arith.remsi %28, %29 : vector<1x288xi32>
    %c1_i32 = arith.constant 1 : i32
    %31 = vector.broadcast %c1_i32 : i32 to vector<1x288xi32>
    %32 = arith.cmpi sge, %30, %31 : vector<1x288xi32>
    %c17_i32 = arith.constant 17 : i32
    %33 = vector.broadcast %c17_i32 : i32 to vector<1x288xi32>
    %34 = arith.cmpi slt, %30, %33 : vector<1x288xi32>
    %35 = arith.andi %32, %34 : vector<1x288xi1>
    %c288_i32_32 = arith.constant 288 : i32
    %36 = vector.broadcast %c288_i32_32 : i32 to vector<1x288xi32>
    %37 = arith.cmpi slt, %28, %36 : vector<1x288xi32>
    %38 = arith.andi %35, %37 : vector<1x288xi1>
    %cst_33 = arith.constant 0.000000e+00 : f32
    %39 = vector.shape_cast %38 : vector<1x288xi1> to vector<1x288xi1>
    %40 = vector.broadcast %39 : vector<1x288xi1> to vector<8x288xi1>
    %41 = vector.broadcast %cst_33 : f32 to vector<8x288xf32>
    %42 = arith.select %40, %20, %41 : vector<8x288xi1>, vector<8x288xf32>
    %cst_34 = arith.constant dense<0.000000e+00> : vector<8xf32>
    %43 = vector.multi_reduction <add>, %42, %cst_34 [1] : vector<8x288xf32> to vector<8xf32>
    %44 = vector.shape_cast %43 : vector<8xf32> to vector<8x1xf32>
    %45 = arith.mulf %42, %20 : vector<8x288xf32>
    %cst_35 = arith.constant dense<0.000000e+00> : vector<8xf32>
    %46 = vector.multi_reduction <add>, %45, %cst_35 [1] : vector<8x288xf32> to vector<8xf32>
    %47 = vector.shape_cast %46 : vector<8xf32> to vector<8x1xf32>
    %c0_i32 = arith.constant 0 : i32
    %48 = arith.cmpi eq, %arg1, %c0_i32 : i32
    %49 = arith.extui %48 : i1 to i32
    %c0_i32_36 = arith.constant 0 : i32
    %50 = arith.cmpi ne, %49, %c0_i32_36 : i32
    scf.if %50 {
      %cst_49 = arith.constant 0.000000e+00 : f32
      %63 = vector.broadcast %cst_49 : f32 to vector<8x1xf32>
      %c0_50 = arith.constant 0 : index
      %c0_51 = arith.constant 0 : index
      %c0_52 = arith.constant 0 : index
      %64 = vector.load %arg5[%c0_50, %c0_51, %c0_52] : memref<1x8x1xf32, #tpu.memory_space<vmem>>, vector<1x8x1xf32>
      %65 = vector.shape_cast %64 : vector<1x8x1xf32> to vector<8x1xf32>
      %66 = vector.shape_cast %63 : vector<8x1xf32> to vector<1x8x1xf32>
      tpu.vector_store %arg5[%c0_50, %c0_51, %c0_52], %66 {strides = array<i32>} : memref<1x8x1xf32, #tpu.memory_space<vmem>>, vector<1x8x1xf32>,
      %cst_53 = arith.constant 0.000000e+00 : f32
      %67 = vector.broadcast %cst_53 : f32 to vector<8x1xf32>
      %c0_54 = arith.constant 0 : index
      %c0_55 = arith.constant 0 : index
      %c0_56 = arith.constant 0 : index
      %68 = vector.load %arg6[%c0_54, %c0_55, %c0_56] : memref<1x8x1xf32, #tpu.memory_space<vmem>>, vector<1x8x1xf32>
      %69 = vector.shape_cast %68 : vector<1x8x1xf32> to vector<8x1xf32>
      %70 = vector.shape_cast %67 : vector<8x1xf32> to vector<1x8x1xf32>
      tpu.vector_store %arg6[%c0_54, %c0_55, %c0_56], %70 {strides = array<i32>} : memref<1x8x1xf32, #tpu.memory_space<vmem>>, vector<1x8x1xf32>,
    } else {
    }
    %c0_37 = arith.constant 0 : index
    %c0_38 = arith.constant 0 : index
    %c0_39 = arith.constant 0 : index
    %51 = vector.load %arg5[%c0_37, %c0_38, %c0_39] : memref<1x8x1xf32, #tpu.memory_space<vmem>>, vector<1x8x1xf32>
    %52 = vector.shape_cast %51 : vector<1x8x1xf32> to vector<8x1xf32>
    %53 = arith.addf %52, %44 : vector<8x1xf32>
    %c0_40 = arith.constant 0 : index
    %c0_41 = arith.constant 0 : index
    %c0_42 = arith.constant 0 : index
    %54 = vector.load %arg5[%c0_40, %c0_41, %c0_42] : memref<1x8x1xf32, #tpu.memory_space<vmem>>, vector<1x8x1xf32>
    %55 = vector.shape_cast %54 : vector<1x8x1xf32> to vector<8x1xf32>
    %56 = vector.shape_cast %53 : vector<8x1xf32> to vector<1x8x1xf32>
    tpu.vector_store %arg5[%c0_40, %c0_41, %c0_42], %56 {strides = array<i32>} : memref<1x8x1xf32, #tpu.memory_space<vmem>>, vector<1x8x1xf32>,
    %c0_43 = arith.constant 0 : index
    %c0_44 = arith.constant 0 : index
    %c0_45 = arith.constant 0 : index
    %57 = vector.load %arg6[%c0_43, %c0_44, %c0_45] : memref<1x8x1xf32, #tpu.memory_space<vmem>>, vector<1x8x1xf32>
    %58 = vector.shape_cast %57 : vector<1x8x1xf32> to vector<8x1xf32>
    %59 = arith.addf %58, %47 : vector<8x1xf32>
    %c0_46 = arith.constant 0 : index
    %c0_47 = arith.constant 0 : index
    %c0_48 = arith.constant 0 : index
    %60 = vector.load %arg6[%c0_46, %c0_47, %c0_48] : memref<1x8x1xf32, #tpu.memory_space<vmem>>, vector<1x8x1xf32>
    %61 = vector.shape_cast %60 : vector<1x8x1xf32> to vector<8x1xf32>
    %62 = vector.shape_cast %59 : vector<8x1xf32> to vector<1x8x1xf32>
    tpu.vector_store %arg6[%c0_46, %c0_47, %c0_48], %62 {strides = array<i32>} : memref<1x8x1xf32, #tpu.memory_space<vmem>>, vector<1x8x1xf32>,
    return
  }
  func.func @transform_0(%arg0: i32, %arg1: i32) -> (i32, i32, i32, i32) {
    %c0_i32 = arith.constant 0 : i32
    %c0_i32_0 = arith.constant 0 : i32
    %c0_i32_1 = arith.constant 0 : i32
    return %arg0, %arg1, %c0_i32, %c0_i32_0 : i32, i32, i32, i32
  }
  func.func @transform_1(%arg0: i32, %arg1: i32) -> (i32, i32) {
    %c0_i32 = arith.constant 0 : i32
    %c0_i32_0 = arith.constant 0 : i32
    %c0_i32_1 = arith.constant 0 : i32
    return %c0_i32, %c0_i32_0 : i32, i32
  }
  func.func @transform_2(%arg0: i32, %arg1: i32) -> (i32, i32, i32) {
    %c0_i32 = arith.constant 0 : i32
    %c0_i32_0 = arith.constant 0 : i32
    return %arg0, %c0_i32, %arg1 : i32, i32, i32
  }
  func.func @transform_3(%arg0: i32, %arg1: i32) -> (i32, i32, i32) {
    %c0_i32 = arith.constant 0 : i32
    %c0_i32_0 = arith.constant 0 : i32
    %c0_i32_1 = arith.constant 0 : i32
    return %arg0, %c0_i32, %c0_i32_0 : i32, i32, i32
  }
  func.func @transform_4(%arg0: i32, %arg1: i32) -> (i32, i32, i32) {
    %c0_i32 = arith.constant 0 : i32
    %c0_i32_0 = arith.constant 0 : i32
    %c0_i32_1 = arith.constant 0 : i32
    return %arg0, %c0_i32, %c0_i32_0 : i32, i32, i32
  }
}

module attributes {stable_mosaic.version = 11 : i64} {
  func.func @_bn_relu_kernel(%arg0: i32, %arg1: i32, %arg2: memref<1x8x16x18xbf16, #tpu.memory_space<vmem>>, %arg3: memref<8x1x1xf32, #tpu.memory_space<vmem>>, %arg4: memref<8x1x1xf32, #tpu.memory_space<vmem>>, %arg5: memref<1x8x16x16xf32, #tpu.memory_space<vmem>>) attributes {dimension_semantics = [#tpu.dimension_semantics<parallel>, #tpu.dimension_semantics<parallel>], iteration_bounds = array<i64: 2, 1>, scalar_prefetch = 0 : i64, scratch_operands = 0 : i64, tpu.core_type = #tpu.core_type<tc>, window_params = [{transform_indices = @transform_0, window_bounds = array<i64: 1, 8, 16, 18>}, {pipeline_mode = #tpu.pipeline_mode<synchronous>, transform_indices = @transform_1, window_bounds = array<i64: 8, 1, 1>}, {pipeline_mode = #tpu.pipeline_mode<synchronous>, transform_indices = @transform_2, window_bounds = array<i64: 8, 1, 1>}, {transform_indices = @transform_3, window_bounds = array<i64: 1, 8, 16, 16>}]} {
    %c0 = arith.constant 0 : index
    %c0_0 = arith.constant 0 : index
    %c0_1 = arith.constant 0 : index
    %c1 = arith.constant 1 : index
    %0 = vector.load %arg2[%c0, %c0_0, %c0_1, %c1] : memref<1x8x16x18xbf16, #tpu.memory_space<vmem>>, vector<1x8x16x16xbf16>
    %1 = vector.shape_cast %0 : vector<1x8x16x16xbf16> to vector<8x16x16xbf16>
    %2 = arith.extf %1 : vector<8x16x16xbf16> to vector<8x16x16xf32>
    %c0_2 = arith.constant 0 : index
    %c0_3 = arith.constant 0 : index
    %c0_4 = arith.constant 0 : index
    %3 = vector.load %arg3[%c0_2, %c0_3, %c0_4] : memref<8x1x1xf32, #tpu.memory_space<vmem>>, vector<8x1x1xf32>
    %4 = vector.broadcast %3 : vector<8x1x1xf32> to vector<8x16x16xf32>
    %5 = arith.mulf %2, %4 : vector<8x16x16xf32>
    %c0_5 = arith.constant 0 : index
    %c0_6 = arith.constant 0 : index
    %c0_7 = arith.constant 0 : index
    %6 = vector.load %arg4[%c0_5, %c0_6, %c0_7] : memref<8x1x1xf32, #tpu.memory_space<vmem>>, vector<8x1x1xf32>
    %7 = vector.broadcast %6 : vector<8x1x1xf32> to vector<8x16x16xf32>
    %8 = arith.addf %5, %7 : vector<8x16x16xf32>
    %cst = arith.constant 0.000000e+00 : f32
    %9 = vector.broadcast %cst : f32 to vector<8x16x16xf32>
    %10 = arith.maximumf %8, %9 : vector<8x16x16xf32>
    %c0_8 = arith.constant 0 : index
    %c0_9 = arith.constant 0 : index
    %c0_10 = arith.constant 0 : index
    %c0_11 = arith.constant 0 : index
    %11 = vector.load %arg5[%c0_8, %c0_9, %c0_10, %c0_11] : memref<1x8x16x16xf32, #tpu.memory_space<vmem>>, vector<1x8x16x16xf32>
    %12 = vector.shape_cast %11 : vector<1x8x16x16xf32> to vector<8x16x16xf32>
    %13 = vector.shape_cast %10 : vector<8x16x16xf32> to vector<1x8x16x16xf32>
    tpu.vector_store %arg5[%c0_8, %c0_9, %c0_10, %c0_11], %13 {strides = array<i32>} : memref<1x8x16x16xf32, #tpu.memory_space<vmem>>, vector<1x8x16x16xf32>,
    return
  }
  func.func @transform_0(%arg0: i32, %arg1: i32) -> (i32, i32, i32, i32) {
    %c0_i32 = arith.constant 0 : i32
    %c0_i32_0 = arith.constant 0 : i32
    %c0_i32_1 = arith.constant 0 : i32
    return %arg0, %c0_i32, %arg1, %c0_i32_0 : i32, i32, i32, i32
  }
  func.func @transform_1(%arg0: i32, %arg1: i32) -> (i32, i32, i32) {
    %c0_i32 = arith.constant 0 : i32
    %c0_i32_0 = arith.constant 0 : i32
    %c0_i32_1 = arith.constant 0 : i32
    %c0_i32_2 = arith.constant 0 : i32
    return %c0_i32, %c0_i32_0, %c0_i32_1 : i32, i32, i32
  }
  func.func @transform_2(%arg0: i32, %arg1: i32) -> (i32, i32, i32) {
    %c0_i32 = arith.constant 0 : i32
    %c0_i32_0 = arith.constant 0 : i32
    %c0_i32_1 = arith.constant 0 : i32
    %c0_i32_2 = arith.constant 0 : i32
    return %c0_i32, %c0_i32_0, %c0_i32_1 : i32, i32, i32
  }
  func.func @transform_3(%arg0: i32, %arg1: i32) -> (i32, i32, i32, i32) {
    %c0_i32 = arith.constant 0 : i32
    %c0_i32_0 = arith.constant 0 : i32
    %c0_i32_1 = arith.constant 0 : i32
    return %arg0, %c0_i32, %arg1, %c0_i32_0 : i32, i32, i32, i32
  }
}

</mosaic_0001>

<bundles_post_ra>
// kernel: conv_block_forward.3
= control target key start
LH: loop header
LB: loop body
LE: loop exit
PB: predicated region body
PF: predicated region fallthrough
CT: control target
= control target key end

     0   :  { %8 = vsyncpa [#allocation3], 0  ;;  %s1092_s0 = inlined_call_operand.vmem [shape: bf16[2,8,16,18], index: 0, kind: input, shape index: {}]   ;;  %s1093_s1 = inlined_call_operand.vmem [shape: f32[8,1,1], index: 1, kind: input, shape index: {}]   ;;  %s1094_s2 = inlined_call_operand.vmem [shape: f32[8,1,1], index: 2, kind: input, shape index: {}]   ;;  %s1095_s3 = inlined_call_operand.hbm [shape: f32[2,8,16,16], index: 3, kind: output, shape index: {}]  }
   0x1   :  { %10 = vsyncpa [#allocation3 + $0x1], 0  ;;  %s852_s12 = smov 0   ;;  %s854_s13 = smov 0  }
   0x2   :  { %s856_s14 = smov 0   ;;  %s858_s15 = smov 0  }
   0x3   :  { %s860_s16 = smov 0   ;;  %s862_s17 = smov 0  }
   0x4 LB: > { %s616_s18 = sadd.s32 4294967295, %s825_s17   ;;  %s617_s19 = sadd.s32 4294967294, %s825_s17   ;;  %s825_s17 = sphi %s862_s17, %s16_s17   ;;  %s821_s16 = sphi %s860_s16, %s1102_s16   ;;  %s817_s15 = sphi %s858_s15, %s1101_s15   ;;  %s813_s14 = sphi %s856_s14, %s1100_s14   ;;  %s809_s13 = sphi %s854_s13, %s1099_s13   ;;  %s805_s12 = sphi %s852_s12, %s1098_s12  }
   0x5   : > { %s28_s20 = sadd.s32 1, %s821_s16  ;;  %s107_s21 = sadd.s32 1, %s813_s14 }
   0x6   : > { %p30_p0 = scmp.ge.s32.totalorder %s28_s20, 2  ;;  %p117_p1 = scmp.ne.s32.totalorder %s813_s14, %s809_s13 }
   0x7   : > { %p118_p2 = scmp.eq.s32.totalorder %s616_s18, 1  ;;  %p123_p3 = scmp.ne.s32.totalorder %s809_s13, %s805_s12 }
   0x8   : > { %s1104_s20 = smov (%p30_p0, %s28_s20), 0  ;;  %p124_p5 = scmp.eq.s32.totalorder %s617_s19, 1 }
   0x9   : > { %p892_p4 = por %p118_p2, %p117_p1  ;;  %s102_s23 = ssub.s32 %s821_s16, %s1104_s20 }
   0xa   : > { %p620_p6 = scmp.ge.s32.totalorder %s825_s17, 1  ;;  %p105_p7 = scmp.eq.s32.totalorder %s102_s23, 0 }
   0xb   : > { %p899_p8 = por %p124_p5, %p123_p3  ;;  %p161_p9 = scmp.lt.s32.totalorder %s825_s17, 3 }
   0xc   : > { %s905_s25 = scalar_select %p105_p7, %s813_s14, %s107_s21  }
   0xd   : > { %p162_p10 = pnand %p620_p6, %p161_p9 }
   0xe   : > { %v626_v0 = vld [vmem:[%s1093_s1 + $0x2] ss:$0 sm:$0xff] (!%p162_p10)  ;;  %v624_v1 = vld [vmem:[%s1093_s1] ss:$0 sm:$0xff] (!%p162_p10)  ;;  %v827_v2 = vmov (!%p162_p10), 0   ;;  %p190_p11 = scmp.lt.s32.totalorder (!%p162_p10), %s817_s15, 1 }
   0xf   : > { %165 = sbr.rel (%p162_p10) target bundleno = 322 (0x142), region = 32  ;;  %746 = vset.pattern.permute.xlu1 (!%p162_p10), %v827_v2  ;;  %745 = vset.pattern.permute.xlu0 (!%p162_p10), %v827_v2  ;;  %v627_v3 = vld [vmem:[%s1093_s1 + $0x3] ss:$0 sm:$0xff] (!%p162_p10)  ;;  %v625_v4 = vld [vmem:[%s1093_s1 + $0x1] ss:$0 sm:$0xff] (!%p162_p10)  ;;  %s828_s29 = smov (!%p162_p10), 127  }
  0x10   : > { %289 = vperm.xlu1 (!%p162_p10), %746, %v626_v0   ;;  %281 = vperm.xlu0 (!%p162_p10), %745, %v624_v1   ;;  %v629_v5 = vld [vmem:[%s1093_s1 + $0x5] ss:$0 sm:$0xff] (!%p162_p10)  ;;  %v628_v6 = vld [vmem:[%s1093_s1 + $0x4] ss:$0 sm:$0xff] (!%p162_p10)  ;;  %v631_v7 = vld [vmem:[%s1093_s1 + $0x7] ss:$0 sm:$0xff] (!%p162_p10) }
  0x11   : > { %v630_v8 = vld [vmem:[%s1093_s1 + $0x6] ss:$0 sm:$0xff] (!%p162_p10)  ;;  %v633_v9 = vld [vmem:[%s1094_s2 + $0x1] ss:$0 sm:$0xff] (!%p162_p10)  ;;  %v632_v10 = vld [vmem:[%s1094_s2] ss:$0 sm:$0xff] (!%p162_p10) }
  0x12   : > { %v635_v11 = vld [vmem:[%s1094_s2 + $0x3] ss:$0 sm:$0xff] (!%p162_p10)  ;;  %v634_v12 = vld [vmem:[%s1094_s2 + $0x2] ss:$0 sm:$0xff] (!%p162_p10)  ;;  %v637_v13 = vld [vmem:[%s1094_s2 + $0x5] ss:$0 sm:$0xff] (!%p162_p10) }
  0x13   : > { %v636_v14 = vld [vmem:[%s1094_s2 + $0x4] ss:$0 sm:$0xff] (!%p162_p10)  ;;  %v639_v15 = vld [vmem:[%s1094_s2 + $0x7] ss:$0 sm:$0xff] (!%p162_p10)  ;;  %v638_v16 = vld [vmem:[%s1094_s2 + $0x6] ss:$0 sm:$0xff] (!%p162_p10) }
  0x14   : > { %293 = vperm.xlu1 (!%p162_p10), %746, %v627_v3   ;;  %285 = vperm.xlu0 (!%p162_p10), %745, %v625_v4   ;;  %s186_s30 = sand.u32 (!%p162_p10), 1, %s809_s13   ;;  %vm504_vm0 = vcmask (!%p162_p10), 130048   ;;  %s646_s6 = sshll.u32 (!%p162_p10), %s817_s15, 11 }
  0x15   : > { %s621_s4 = sshll.u32 (!%p162_p10), %s186_s30, 7  ;;  %s1036_s10 = scalar_lea.hbm (!%p162_p10), %s1095_s3, %s646_s6 }
  0x16   : > { %s191_s21 = scalar_select %p190_p11, %s817_s15, 1 }
  0x17   : > { %s1001_s5 = scalar_lea.vmem [#allocation2], %s621_s4  ;;  %s1046_s15 = scalar_lea.sflag [#allocation3], %s186_s30 }
  0x18   : > { %301 = vperm.xlu1 %746, %v629_v5   ;;  %297 = vperm.xlu0 %745, %v628_v6   ;;  %s645_s23 = sshll.u32 %s191_s21, 6  ;;  %s537_s7 = sshll.u32 %s1001_s5, 4  ;;  %s1038_s7 = int_to_ptr.vmem [resolvable:$true] %s537_s7 }
  0x19   : > { %s960_s28 = scalar_lea.vmem %s1092_s0, %s645_s23  ;;  %s747_s11 = scalar_lea.vmem %s1038_s7, 2048 }
  0x1a   : > { %v648_v21 = vld [vmem:[%s960_s28] sm:$0xff]   ;;  %v679_v24 = vld [vmem:[%s960_s28 + $0x8] sm:$0xff]   ;;  %v680_v30 = vld [vmem:[%s960_s28 + $0x10] sm:$0xff]   ;;  %p748_p12 = scmp.ne.s32.totalorder %s1038_s7, %s747_s11  ;;  %s829_s18 = smov [#allocation2]  }
  0x1b   : > { %v649_v25 = vunpack.c.l.bf16 %v648_v21  ;;  %v650_v26 = vunpack.c.h.bf16 %v648_v21  ;;  %v654_v29 = vunpack.c.h.bf16 %v679_v24  ;;  %v653_v31 = vunpack.c.l.bf16 %v679_v24  ;;  %v681_v41 = vld [vmem:[%s960_s28 + $0x18] sm:$0xff]   ;;  %v682_v52 = vld [vmem:[%s960_s28 + $0x20] sm:$0xff]   ;;  %v683_v61 = vld [vmem:[%s960_s28 + $0x28] sm:$0xff]   ;;  %s751_s19 = sshll.u32 %s829_s18, 4  ;;  %s752_s19 = int_to_ptr.vmem [resolvable:$false] %s751_s19 }
  0x1c   : > { %309 = vperm.xlu1 %746, %v631_v7   ;;  %305 = vperm.xlu0 %745, %v630_v8   ;;  %v658_v36 = vunpack.c.h.bf16 %v680_v30  ;;  %v657_v40 = vunpack.c.l.bf16 %v680_v30  ;;  %v662_v49 = vunpack.c.h.bf16 %v681_v41  ;;  %v661_v51 = vunpack.c.l.bf16 %v681_v41  ;;  %v684_v8 = vld [vmem:[%s960_s28 + $0x30] sm:$0xff]   ;;  %p749_p13 = pnand %p748_p12, %p892_p4  ;;  %s753_s21 = scalar_lea.vmem %s752_s19, 4096 }
  0x1d   : > { %v666_v59 = vunpack.c.h.bf16 %v682_v52  ;;  %v665_v62 = vunpack.c.l.bf16 %v682_v52  ;;  %v670_v4 = vunpack.c.h.bf16 %v683_v61  ;;  %v669_v6 = vunpack.c.l.bf16 %v683_v61  ;;  %p754_p1 = scmp.lt.s32.totalorder %s1038_s7, %s752_s19  ;;  %p755_p2 = scmp.lt.s32.totalorder %s753_s21, %s747_s11 }
  0x1e   : > { %p750_p0 = pneg %p749_p13 }
  0x1f   : > { %p756_p3 = por %p755_p2, %p754_p1 }
  0x20   : > { %381 = vperm.xlu1 %746, %v633_v9   ;;  %377 = vperm.xlu0 %745, %v632_v10  }
  0x21   : > { %p757_p5 = pnand %p756_p3, %p750_p0 }
  0x24   : > { %389 = vperm.xlu1 %746, %v635_v11   ;;  %385 = vperm.xlu0 %745, %v634_v12  }
  0x28   : > { %397 = vperm.xlu1 %746, %v637_v13   ;;  %393 = vperm.xlu0 %745, %v636_v14  }
  0x2c   : > { %405 = vperm.xlu1 %746, %v639_v15   ;;  %401 = vperm.xlu0 %745, %v638_v16   ;;  %v674_v15 = vunpack.c.h.bf16 %v684_v8 }
  0x8f   : > { %v290_v17 = vpop.permute.xlu1 %289  ;;  %v282_v18 = vpop.permute.xlu0 %281 }
  0x90   : > { %v312_v32 = vmul.f32 %v649_v25, %v282_v18  ;;  %v313_v33 = vmul.f32 %v650_v26, %v282_v18  ;;  %v317_v48 = vmul.f32 %v658_v36, %v290_v17  ;;  %v316_v50 = vmul.f32 %v657_v40, %v290_v17  ;;  %v685_v17 = vld [vmem:[%s960_s28 + $0x38] sm:$0xff]  }
  0x91   : > { %v673_v18 = vunpack.c.l.bf16 %v684_v8  ;;  %v678_v25 = vunpack.c.h.bf16 %v685_v17 }
  0x93   : > { %v294_v19 = vpop.permute.xlu1 %293  ;;  %v286_v20 = vpop.permute.xlu0 %285 }
  0x94   : > { %v315_v37 = vmul.f32 %v654_v29, %v286_v20  ;;  %v314_v42 = vmul.f32 %v653_v31, %v286_v20  ;;  %v319_v58 = vmul.f32 %v662_v49, %v294_v19  ;;  %v318_v60 = vmul.f32 %v661_v51, %v294_v19 }
  0x95   : > { %v677_v29 = vunpack.c.l.bf16 %v685_v17 }
  0x97   : > { %v963_v22 = vpop.permute.xlu1 %301  ;;  %v298_v23 = vpop.permute.xlu0 %297 }
  0x98   : > { %v321_v5 = vmul.f32 %v666_v59, %v298_v23  ;;  %v320_v7 = vmul.f32 %v665_v62, %v298_v23  ;;  %v323_v14 = vmul.f32 %v670_v4, %v963_v22  ;;  %v322_v16 = vmul.f32 %v669_v6, %v963_v22 }
  0x9b   : > { %v966_v27 = vpop.permute.xlu1 %309  ;;  %v968_v28 = vpop.permute.xlu0 %305 }
  0x9c   : > { %v325_v26 = vmul.f32 %v674_v15, %v968_v28  ;;  %v324_v30 = vmul.f32 %v673_v18, %v968_v28  ;;  %v326_v36 = vmul.f32 %v677_v29, %v966_v27 }
  0x9f   : > { %v382_v34 = vpop.permute.xlu1 %381  ;;  %v378_v35 = vpop.permute.xlu0 %377 }
  0xa0   : > { %v408_v38 = vadd.f32 %v378_v35, %v312_v32  ;;  %v409_v39 = vadd.f32 %v378_v35, %v313_v33  ;;  %v411_v43 = vadd.f32 %v382_v34, %v315_v37  ;;  %v410_v46 = vadd.f32 %v382_v34, %v314_v42 }
  0xa1   : > { %v327_v35 = vmul.f32 %v678_v25, %v966_v27 }
  0xa2   : > { %v424_v44 = vmax.f32 %v408_v38, 0.0  ;;  %v425_v45 = vmax.f32 %v409_v39, 0.0  ;;  %v427_v53 = vmax.f32 %v411_v43, 0.0  ;;  %v426_v55 = vmax.f32 %v410_v46, 0.0 }
  0xa3   : > { %v386_v47 = vpop.permute.xlu0 %385  ;;  %v390_v56 = vpop.permute.xlu1 %389 }
  0xa4   : > { %458 = vrot.lane.b32.xlu1 %v425_v45, %s828_s29  ;;  %456 = vrot.lane.b32.xlu0 %v424_v44, %s828_s29  ;;  %v413_v54 = vadd.f32 %v386_v47, %v317_v48  ;;  %v412_v57 = vadd.f32 %v386_v47, %v316_v50  ;;  %v415_v63 = vadd.f32 %v390_v56, %v319_v58 }
  0xa5   : > { %v414_v1 = vadd.f32 %v390_v56, %v318_v60 }
  0xa6   : > { %v429_v0 = vmax.f32 %v413_v54, 0.0  ;;  %v428_v2 = vmax.f32 %v412_v57, 0.0  ;;  %v431_v9 = vmax.f32 %v415_v63, 0.0 }
  0xa7   : > { %v394_v3 = vpop.permute.xlu0 %393  ;;  %v430_v11 = vmax.f32 %v414_v1, 0.0  ;;  %v398_v12 = vpop.permute.xlu1 %397 }
  0xa8   : > { %462 = vrot.lane.b32.xlu1 %v427_v53, %s828_s29  ;;  %460 = vrot.lane.b32.xlu0 %v426_v55, %s828_s29  ;;  %v417_v10 = vadd.f32 %v394_v3, %v321_v5  ;;  %v416_v13 = vadd.f32 %v394_v3, %v320_v7  ;;  %v419_v19 = vadd.f32 %v398_v12, %v323_v14 }
  0xa9   : > { %v418_v21 = vadd.f32 %v398_v12, %v322_v16 }
  0xaa   : > { %v433_v20 = vmax.f32 %v417_v10, 0.0  ;;  %v432_v23 = vmax.f32 %v416_v13, 0.0  ;;  %v435_v22 = vmax.f32 %v419_v19, 0.0 }
  0xab   : > { %v402_v24 = vpop.permute.xlu0 %401  ;;  %v434_v32 = vmax.f32 %v418_v21, 0.0  ;;  %v406_v33 = vpop.permute.xlu1 %405 }
  0xac   : > { %466 = vrot.lane.b32.xlu1 %v429_v0, %s828_s29  ;;  %464 = vrot.lane.b32.xlu0 %v428_v2, %s828_s29  ;;  %v421_v31 = vadd.f32 %v402_v24, %v325_v26  ;;  %v420_v34 = vadd.f32 %v402_v24, %v324_v30  ;;  %v423_v37 = vadd.f32 %v406_v33, %v327_v35 }
  0xad   : > { %v422_v28 = vadd.f32 %v406_v33, %v326_v36 }
  0xae   : > { %v437_v38 = vmax.f32 %v421_v31, 0.0  ;;  %v436_v39 = vmax.f32 %v420_v34, 0.0  ;;  %v439_v40 = vmax.f32 %v423_v37, 0.0 }
  0xaf   : > { %v438_v41 = vmax.f32 %v422_v28, 0.0 }
  0xb0   : > { %470 = vrot.lane.b32.xlu1 %v431_v9, %s828_s29  ;;  %468 = vrot.lane.b32.xlu0 %v430_v11, %s828_s29 }
  0xb4   : > { %474 = vrot.lane.b32.xlu1 %v433_v20, %s828_s29  ;;  %472 = vrot.lane.b32.xlu0 %v432_v23, %s828_s29 }
  0xb8   : > { %478 = vrot.lane.b32.xlu1 %v435_v22, %s828_s29  ;;  %476 = vrot.lane.b32.xlu0 %v434_v32, %s828_s29 }
  0xbc   : > { %482 = vrot.lane.b32.xlu1 %v437_v38, %s828_s29  ;;  %480 = vrot.lane.b32.xlu0 %v436_v39, %s828_s29 }
  0xc0   : > { %486 = vrot.lane.b32.xlu1 %v439_v40, %s828_s29  ;;  %484 = vrot.lane.b32.xlu0 %v438_v41, %s828_s29 }
 0x116   : > { %v459_v27 = vpop.permute.xlu1 %458  ;;  %v457_v42 = vpop.permute.xlu0 %456 }
 0x117   : > { %506 = vst.msk [vmem:[%s1001_s5 + $0x8] sm:$0xff] %vm504_vm0, %v459_v27  ;;  %505 = vst.msk [vmem:[%s1001_s5] sm:$0xff] %vm504_vm0, %v457_v42 }
 0x11a   : > { %v463_v43 = vpop.permute.xlu1 %462  ;;  %v461_v44 = vpop.permute.xlu0 %460 }
 0x11b   : > { %508 = vst.msk [vmem:[%s1001_s5 + $0x18] sm:$0xff] %vm504_vm0, %v463_v43  ;;  %507 = vst.msk [vmem:[%s1001_s5 + $0x10] sm:$0xff] %vm504_vm0, %v461_v44 }
 0x11e   : > { %v467_v45 = vpop.permute.xlu1 %466  ;;  %v465_v46 = vpop.permute.xlu0 %464 }
 0x11f   : > { %510 = vst.msk [vmem:[%s1001_s5 + $0x28] sm:$0xff] %vm504_vm0, %v467_v45  ;;  %509 = vst.msk [vmem:[%s1001_s5 + $0x20] sm:$0xff] %vm504_vm0, %v465_v46 }
 0x122   : > { %v471_v47 = vpop.permute.xlu1 %470  ;;  %v469_v48 = vpop.permute.xlu0 %468 }
 0x123   : > { %512 = vst.msk [vmem:[%s1001_s5 + $0x38] sm:$0xff] %vm504_vm0, %v471_v47  ;;  %511 = vst.msk [vmem:[%s1001_s5 + $0x30] sm:$0xff] %vm504_vm0, %v469_v48 }
 0x126   : > { %v475_v49 = vpop.permute.xlu1 %474  ;;  %v473_v50 = vpop.permute.xlu0 %472 }
 0x127   : > { %514 = vst.msk [vmem:[%s1001_s5 + $0x48] sm:$0xff] %vm504_vm0, %v475_v49  ;;  %513 = vst.msk [vmem:[%s1001_s5 + $0x40] sm:$0xff] %vm504_vm0, %v473_v50 }
 0x12a   : > { %v479_v51 = vpop.permute.xlu1 %478  ;;  %v477_v52 = vpop.permute.xlu0 %476 }
 0x12b   : > { %516 = vst.msk [vmem:[%s1001_s5 + $0x58] sm:$0xff] %vm504_vm0, %v479_v51  ;;  %515 = vst.msk [vmem:[%s1001_s5 + $0x50] sm:$0xff] %vm504_vm0, %v477_v52 }
 0x12e   : > { %v483_v53 = vpop.permute.xlu1 %482  ;;  %v481_v54 = vpop.permute.xlu0 %480 }
 0x12f   : > { %518 = vst.msk [vmem:[%s1001_s5 + $0x68] sm:$0xff] %vm504_vm0, %v483_v53  ;;  %517 = vst.msk [vmem:[%s1001_s5 + $0x60] sm:$0xff] %vm504_vm0, %v481_v54 }
 0x132   : > { %v487_v55 = vpop.permute.xlu1 %486  ;;  %v485_v56 = vpop.permute.xlu0 %484 }
 0x133   : > { %520 = vst.msk [vmem:[%s1001_s5 + $0x78] sm:$0xff] %vm504_vm0, %v487_v55  ;;  %519 = vst.msk [vmem:[%s1001_s5 + $0x70] sm:$0xff] %vm504_vm0, %v485_v56 }
 0x134   : > { %760 = shalt.err (!%p757_p5)
}
 0x135   : > { %s761_s23 = scalar_lea.hbm %s1036_s10, 2048  ;;  %s765_s28 = scalar_lea.hbm %s1095_s3, 4096 }
 0x136   : > { %p762_p6 = scmp.ne.s32.totalorder %s1036_s10, %s761_s23  ;;  %p766_p10 = scmp.lt.u32.totalorder %s1036_s10, %s1095_s3 }
 0x137   : > { %p767_p11 = scmp.lt.u32.totalorder %s765_s28, %s761_s23  ;;  %p769_p13 = scmp.lt.u32.totalorder %s761_s23, %s1036_s10 }
 0x138   : > { %p763_p7 = pnand %p762_p6, %p892_p4 }
 0x139   : > { %p768_p12 = por %p767_p11, %p766_p10 }
 0x13a   : > { %p764_p9 = pneg %p763_p7 }
 0x13b   : > { %p770_p0 = por %p769_p13, %p768_p12 }
 0x13d   : > { %p771_p1 = pnand %p770_p0, %p764_p9 }
 0x13f   : > { %774 = shalt.err (!%p771_p1)
}
 0x140   : > { %s830_s4 = smov 128   ;;  %s831_s5 = smov 8  }
 0x141   : > { %686 = dma.vmem_to_hbm [thread:$0]  (%p892_p4), %s1038_s7, 2048, %s1036_s10, %s1046_s15, %s830_s4, %s830_s4, %s831_s5  }
 0x142 PF: > { %p692_p2 = scmp.ge.s32.totalorder %s825_s17, 2  ;;  %s552_s6 = sand.u32 1, %s805_s12  }
 0x143   : > { %s553_s8 = scalar_lea.sflag [#allocation3], %s552_s6 }
 0x144   : > { %p689_p3 = pnand %p692_p2, %p899_p8 }
 0x146   : > { %800 = dma.done.wait (!%p689_p3), %s553_s8, 2048  }
 0x147   : > { %802 = vsyncadd (!%p689_p3), %s553_s8, 4294965248  ;;  %s16_s17 = sadd.s32 1, %s825_s17   ;;  %s1098_s12 = smov %s809_s13 }
 0x148   : > { %p13_p5 = scmp.ge.s32.totalorder %s16_s17, 4   ;;  %s1099_s13 = smov %s813_s14 }
 0x149   : > { %s1100_s14 = smov %s905_s25  ;;  %s1101_s15 = smov %s821_s16 }
 0x14a   : > { %s1102_s16 = smov %s1104_s20  ;;  %15 = sbr.rel (!%p13_p5) target bundleno = 4 (0x4), region = 67 }
 0x151   :  { %558 = vsyncpa [#allocation3], 1 }
 0x152   :  { %560 = vsyncpa [#allocation3 + $0x1], 1 }

// kernel: conv_block_forward.2
= control target key start
LH: loop header
LB: loop body
LE: loop exit
PB: predicated region body
PF: predicated region fallthrough
CT: control target
= control target key end

     0   :  { %s856_s15 = smov 0   ;;  %s858_s16 = smov 0   ;;  %s947_s0 = inlined_call_operand.vmem [shape: bf16[2,1,16,384], index: 0, kind: input, shape index: {}]   ;;  %s948_s1 = inlined_call_operand.vmem [shape: bf16[8,144], index: 1, kind: input, shape index: {}]   ;;  %s949_s2 = inlined_call_operand.vmem [shape: bf16[2,8,288], index: 2, kind: output, shape index: {0}]   ;;  %s950_s3 = inlined_call_operand.vmem [shape: f32[2,8,1], index: 3, kind: output, shape index: {1}]   ;;  %s951_s4 = inlined_call_operand.vmem [shape: f32[2,8,1], index: 4, kind: output, shape index: {2}]  }
   0x1   :  { %s860_s17 = smov 0  }
   0x2 LB: > { %s27_s18 = sadd.s32 1, %s815_s16  ;;  %p731_p0 = scmp.ge.s32.totalorder %s819_s17, 1  ;;  %s819_s17 = sphi %s860_s17, %s15_s17   ;;  %s815_s16 = sphi %s858_s16, %s953_s16   ;;  %s811_s15 = sphi %s856_s15, %s952_s15  }
   0x3   : > { %p29_p1 = scmp.ge.s32.totalorder %s27_s18, 2  ;;  %p187_p2 = scmp.lt.s32.totalorder %s819_s17, 3 }
   0x5   : > { %s955_s18 = smov (%p29_p1, %s27_s18), 0  ;;  %p188_p3 = pnand %p731_p0, %p187_p2 }
   0x6   : > { %p229_p4 = scmp.lt.s32.totalorder (!%p188_p3), %s811_s15, 1  ;;  %v821_v0 = vmov (!%p188_p3), 0   ;;  %s822_s23 = smov (!%p188_p3), 127   ;;  %v885_v4 = vld [vmem:[%s948_s1] sm:$0xff] (!%p188_p3)  ;;  %vm380_vm0 = vcmask (!%p188_p3), 130048   ;;  %vm283_vm1 = vcmask (!%p188_p3), 1039360   ;;  %v482_v48 = vlaneseq (!%p188_p3) }
   0x7   : > { %191 = sbr.rel (%p188_p3) target bundleno = 548 (0x224), region = 28  ;;  %425 = vmatprep.subr.bf16.mxu1 (!%p188_p3), %v821_v0  ;;  %s823_s24 = smov (!%p188_p3), 126   ;;  %v740_v5 = vcombine.high (!%p188_p3), %v885_v4, %v885_v4  ;;  %vm295_vm2 = vcmask (!%p188_p3), 1031168   ;;  %vm307_vm3 = vcmask (!%p188_p3), 900096   ;;  %vm319_vm4 = vcmask (!%p188_p3), 891904  }
   0x8   : > { %s824_s25 = smov (!%p188_p3), 110   ;;  %s825_s26 = smov (!%p188_p3), 109   ;;  %vm331_vm5 = vcmask (!%p188_p3), 883712   ;;  %vm343_vm6 = vcmask (!%p188_p3), 752640   ;;  %vm355_vm7 = vcmask (!%p188_p3), 744448   ;;  %vm367_vm8 = vcmask (!%p188_p3), 736256  }
   0x9   : > { %s826_s27 = smov (!%p188_p3), 108   ;;  %s827_s28 = smov (!%p188_p3), 92   ;;  %742 = vmatprep.mubr.msk.bf16.mxu1 (!%p188_p3), %vm380_vm0, %v740_v5  ;;  %741 = vmatprep.mubr.msk.bf16.mxu0 (!%p188_p3), %vm380_vm0, %v740_v5  ;;  %v739_v43 = vcombine.low (!%p188_p3), %v885_v4, %v885_v4  ;;  %vm565_vm9 = vcmask (!%p188_p3), 7168   ;;  %v830_v47 = vmov (!%p188_p3), 0.0   ;;  %v483_v49 = vand.u32 (!%p188_p3), 127, %v482_v48 }
   0xa   : > { %s828_s5 = smov (!%p188_p3), 91   ;;  %s829_s6 = smov (!%p188_p3), 90  }
   0xb   : > { %v485_v50 = vadd.s32 (!%p188_p3), 256, %v483_v49  ;;  %v484_v53 = vadd.s32 (!%p188_p3), 128, %v483_v49  ;;  %v912_v54 = vmul.u32.u64.low (!%p188_p3), 3817748708, %v483_v49  ;;  %v913_v55 = vmul.u32.u64.high 3817748708, %v483_v49, %v912_v54 }
   0xd   : > { %v909_v51 = vmul.u32.u64.low (!%p188_p3), 3817748708, %v485_v50  ;;  %v910_v52 = vmul.u32.u64.high 3817748708, %v485_v50, %v909_v51  ;;  %v915_v56 = vmul.u32.u64.low (!%p188_p3), 3817748708, %v484_v53  ;;  %v916_v57 = vmul.u32.u64.high 3817748708, %v484_v53, %v915_v56 }
   0xe   : > { %s957_s15 = smov (!%p229_p4, %s811_s15), 1  ;;  %v496_v60 = vshrl.u32 %v913_v55, 4  ;;  %vm534_vm13 = vcmp.lt.s32.totalorder %v485_v50, 288 }
   0xf   : > { %s749_s19 = smul.u32 24, %s957_s15  ;;  %s734_s7 = sshll.u32 %s957_s15, 3  ;;  %v518_v58 = vshrl.u32 %v910_v52, 4  ;;  %v507_v61 = vshrl.u32 %v916_v57, 4 }
  0x10   : > { %s904_s10 = scalar_lea.vmem %s950_s3, %s734_s7  ;;  %v497_v63 = vmul.u32 18, %v496_v60  ;;  %s750_s11 = smul.u32 12, %s957_s15 }
  0x11   : > { %s237_s22 = scalar_lea.vmem %s947_s0, %s749_s19  ;;  %566 = vst.msk [vmem:[%s904_s10] sm:$0xff] %vm565_vm9, %v830_v47  ;;  %v519_v59 = vmul.u32 18, %v518_v58  ;;  %s255_s21 = scalar_lea.vmem %s951_s4, %s734_s7 }
  0x12   : > { %v791_v1 = vld [vmem:[%s237_s22 + $0x4] ss:$12 sps:$4 sm:$0xff]   ;;  %v793_v2 = vld [vmem:[%s237_s22] ss:$12 sps:$4 sm:$0xff]   ;;  %v794_v3 = vld [vmem:[%s237_s22 + $0x8] ss:$12 sps:$4 sm:$0xff]   ;;  %s246_s14 = scalar_lea.vmem %s949_s2, %s750_s11 }
  0x13   : > { %279 = vrot.lane.b32.xlu0 %v791_v1, %s822_s23  ;;  %384 = vmatprep.subr.bf16.mxu0 %v791_v1  ;;  %v520_v62 = vsub.s32 %v485_v50, %v519_v59  ;;  %567 = vst.msk [vmem:[%s255_s21] sm:$0xff] %vm565_vm9, %v830_v47 }
  0x14   : > { %277 = vrot.lane.b32.xlu1 %v793_v2, %s822_s23  ;;  %385 = vmatpush1.bf16.msra.mxu0 %v793_v2 }
  0x15   : > { %426 = vmatpush1.bf16.msra.mxu1 %v794_v3  ;;  %vm525_vm10 = vcmp.ge.s32.totalorder %v520_v62, 1  ;;  %vm528_vm11 = vcmp.lt.s32.totalorder %v520_v62, 17 }
  0x16   : > { %427 = vmatprep.subr.bf16.mxu1 %v821_v0  ;;  %vm531_vm12 = vmand %vm525_vm10, %vm528_vm11 }
  0x17   : > { %281 = vrot.lane.b32.xlu0 %v794_v3, %s822_s23  ;;  %vm537_vm0 = vmand %vm531_vm12, %vm534_vm13 }
  0x18   : > { %291 = vrot.lane.b32.xlu1 %v791_v1, %s823_s24 }
  0x1b   : > { %293 = vrot.lane.b32.xlu0 %v794_v3, %s823_s24 }
  0x1c   : > { %289 = vrot.lane.b32.xlu1 %v793_v2, %s823_s24 }
  0x1f   : > { %303 = vrot.lane.b32.xlu0 %v791_v1, %s824_s25 }
  0x20   : > { %305 = vrot.lane.b32.xlu1 %v794_v3, %s824_s25 }
  0x23   : > { %301 = vrot.lane.b32.xlu0 %v793_v2, %s824_s25 }
  0x24   : > { %315 = vrot.lane.b32.xlu1 %v791_v1, %s825_s26 }
  0x27   : > { %317 = vrot.lane.b32.xlu0 %v794_v3, %s825_s26 }
  0x28   : > { %313 = vrot.lane.b32.xlu1 %v793_v2, %s825_s26 }
  0x2b   : > { %327 = vrot.lane.b32.xlu0 %v791_v1, %s826_s27 }
  0x2c   : > { %329 = vrot.lane.b32.xlu1 %v794_v3, %s826_s27 }
  0x2f   : > { %325 = vrot.lane.b32.xlu0 %v793_v2, %s826_s27 }
  0x30   : > { %339 = vrot.lane.b32.xlu1 %v791_v1, %s827_s28 }
  0x33   : > { %341 = vrot.lane.b32.xlu0 %v794_v3, %s827_s28 }
  0x34   : > { %337 = vrot.lane.b32.xlu1 %v793_v2, %s827_s28 }
  0x37   : > { %351 = vrot.lane.b32.xlu0 %v791_v1, %s828_s5 }
  0x38   : > { %353 = vrot.lane.b32.xlu1 %v794_v3, %s828_s5 }
  0x3b   : > { %349 = vrot.lane.b32.xlu0 %v793_v2, %s828_s5 }
  0x3c   : > { %363 = vrot.lane.b32.xlu1 %v791_v1, %s829_s6  ;;  %v498_v1 = vsub.s32 %v483_v49, %v497_v63 }
  0x3e   : > { %vm523_vm14 = vcmp.ge.s32.totalorder %v498_v1, 1  ;;  %vm526_vm15 = vcmp.lt.s32.totalorder %v498_v1, 17 }
  0x3f   : > { %365 = vrot.lane.b32.xlu0 %v794_v3, %s829_s6 }
  0x40   : > { %361 = vrot.lane.b32.xlu1 %v793_v2, %s829_s6 }
  0x85   : > { %v280_v6 = vpop.permute.xlu0 %279 }
  0x86   : > { %v278_v7 = vpop.permute.xlu1 %277 }
  0x87   : > { %v284_v11 = vsel %vm283_vm1, %v278_v7, %v280_v6 }
  0x89   : > { %v282_v8 = vpop.permute.xlu0 %281 }
  0x8a   : > { %v292_v9 = vpop.permute.xlu1 %291  ;;  %428 = vmatpush1.bf16.msra.mxu1 %v282_v8  ;;  %v285_v10 = vsel %vm283_vm1, %v280_v6, %v282_v8 }
  0x8b   : > { %386 = vmatprep.subr.bf16.mxu0 %v285_v10  ;;  %429 = vmatprep.subr.bf16.mxu1 %v821_v0 }
  0x8c   : > { %387 = vmatpush1.bf16.msra.mxu0 %v284_v11 }
  0x8d   : > { %v294_v12 = vpop.permute.xlu0 %293 }
  0x8e   : > { %v290_v13 = vpop.permute.xlu1 %289  ;;  %430 = vmatpush1.bf16.msra.mxu1 %v294_v12  ;;  %v297_v14 = vsel %vm295_vm2, %v292_v9, %v294_v12 }
  0x8f   : > { %388 = vmatprep.subr.bf16.mxu0 %v297_v14  ;;  %v296_v15 = vsel %vm295_vm2, %v290_v13, %v292_v9  ;;  %431 = vmatprep.subr.bf16.mxu1 %v821_v0 }
  0x90   : > { %389 = vmatpush1.bf16.msra.mxu0 %v296_v15 }
  0x91   : > { %v304_v16 = vpop.permute.xlu0 %303 }
  0x92   : > { %v306_v17 = vpop.permute.xlu1 %305 }
  0x93   : > { %v309_v18 = vsel %vm307_vm3, %v304_v16, %v306_v17  ;;  %432 = vmatpush1.bf16.msra.mxu1 %v306_v17 }
  0x94   : > { %390 = vmatprep.subr.bf16.mxu0 %v309_v18  ;;  %433 = vmatprep.subr.bf16.mxu1 %v821_v0 }
  0x95   : > { %v302_v19 = vpop.permute.xlu0 %301 }
  0x96   : > { %v316_v20 = vpop.permute.xlu1 %315  ;;  %v308_v21 = vsel %vm307_vm3, %v302_v19, %v304_v16  ;;  %vm529_vm3 = vmand %vm523_vm14, %vm526_vm15 }
  0x97   : > { %391 = vmatpush1.bf16.msra.mxu0 %v308_v21 }
  0x99   : > { %v318_v22 = vpop.permute.xlu0 %317 }
  0x9a   : > { %v314_v23 = vpop.permute.xlu1 %313  ;;  %434 = vmatpush1.bf16.msra.mxu1 %v318_v22  ;;  %v321_v24 = vsel %vm319_vm4, %v316_v20, %v318_v22 }
  0x9b   : > { %392 = vmatprep.subr.bf16.mxu0 %v321_v24  ;;  %v320_v25 = vsel %vm319_vm4, %v314_v23, %v316_v20  ;;  %435 = vmatprep.subr.bf16.mxu1 %v821_v0  ;;  %vm479_vm4 = vcmask 257024  }
  0x9c   : > { %393 = vmatpush1.bf16.msra.mxu0 %v320_v25  ;;  %v568_v25 = vld [vmem:[%s904_s10] sm:$0xff] }
  0x9d   : > { %v328_v26 = vpop.permute.xlu0 %327 }
  0x9e   : > { %v330_v27 = vpop.permute.xlu1 %329 }
  0x9f   : > { %v333_v28 = vsel %vm331_vm5, %v328_v26, %v330_v27  ;;  %436 = vmatpush1.bf16.msra.mxu1 %v330_v27  ;;  %v572_v27 = vld [vmem:[%s255_s21] sm:$0xff] }
  0xa0   : > { %394 = vmatprep.subr.bf16.mxu0 %v333_v28  ;;  %437 = vmatprep.subr.bf16.mxu1 %v821_v0 }
  0xa1   : > { %v326_v29 = vpop.permute.xlu0 %325 }
  0xa2   : > { %v340_v30 = vpop.permute.xlu1 %339  ;;  %v332_v31 = vsel %vm331_vm5, %v326_v29, %v328_v26 }
  0xa3   : > { %395 = vmatpush1.bf16.msra.mxu0 %v332_v31 }
  0xa5   : > { %v342_v32 = vpop.permute.xlu0 %341 }
  0xa6   : > { %v338_v33 = vpop.permute.xlu1 %337  ;;  %438 = vmatpush1.bf16.msra.mxu1 %v342_v32  ;;  %v345_v34 = vsel %vm343_vm6, %v340_v30, %v342_v32 }
  0xa7   : > { %396 = vmatprep.subr.bf16.mxu0 %v345_v34  ;;  %v344_v35 = vsel %vm343_vm6, %v338_v33, %v340_v30  ;;  %439 = vmatprep.subr.bf16.mxu1 %v821_v0  ;;  %vm548_vm6 = vcmask 261120  }
  0xa8   : > { %397 = vmatpush1.bf16.msra.mxu0 %v344_v35 }
  0xa9   : > { %v352_v36 = vpop.permute.xlu0 %351 }
  0xaa   : > { %v354_v37 = vpop.permute.xlu1 %353 }
  0xab   : > { %v357_v38 = vsel %vm355_vm7, %v352_v36, %v354_v37  ;;  %440 = vmatpush1.bf16.msra.mxu1 %v354_v37 }
  0xac   : > { %398 = vmatprep.subr.bf16.mxu0 %v357_v38  ;;  %441 = vmatprep.subr.bf16.mxu1 %v821_v0  ;;  %v508_v0 = vmul.u32 18, %v507_v61 }
  0xad   : > { %v350_v39 = vpop.permute.xlu0 %349 }
  0xae   : > { %v364_v40 = vpop.permute.xlu1 %363  ;;  %v356_v41 = vsel %vm355_vm7, %v350_v39, %v352_v36  ;;  %v509_v2 = vsub.s32 %v484_v53, %v508_v0 }
  0xaf   : > { %399 = vmatpush1.bf16.msra.mxu0 %v356_v41 }
  0xb0   : > { %vm524_vm1 = vcmp.ge.s32.totalorder %v509_v2, 1  ;;  %vm527_vm2 = vcmp.lt.s32.totalorder %v509_v2, 17 }
  0xb1   : > { %v366_v42 = vpop.permute.xlu0 %365  ;;  %vm530_vm5 = vmand %vm524_vm1, %vm527_vm2 }
  0xb2   : > { %v362_v44 = vpop.permute.xlu1 %361  ;;  %442 = vmatpush1.bf16.msra.mxu1 %v366_v42  ;;  %v369_v45 = vsel %vm367_vm8, %v364_v40, %v366_v42 }
  0xb3   : > { %400 = vmatprep.subr.bf16.mxu0 %v369_v45  ;;  %v368_v46 = vsel %vm367_vm8, %v362_v44, %v364_v40 }
  0xb4   : > { %401 = vmatpush1.bf16.msra.mxu0 %v368_v46 }
  0xb5   : > { %458 = vmatmul.mubr.bf16.vlgmr.msra.gmra.mrb[0].mxu1 %v739_v43 }
  0xb7   : > { %417 = vmatmul.mubr.bf16.vlgmr.msra.gmra.mrb[0].mxu0 %v739_v43 }
 0x188   : > { %v459_v3 = vpop.f32.mrb[0].mxu1 }
 0x189   : > { %v748_v4 = vpack.c.bf16 %v459_v3, %v459_v3  ;;  %v546_v5 = vsel %vm537_vm0, %v459_v3, 0.0  ;;  %v461_v6 = vpop.f32.mrb[1].mxu1 }
 0x18a   : > { %v555_v7 = vmul.f32 %v546_v5, %v459_v3  ;;  %v418_v8 = vpop.f32.mrb[0].mxu0  ;;  %v462_v9 = vpop.f32.mrb[2].mxu1  ;;  %v549_v17 = vsel %vm548_vm6, %v546_v5, 0.0 }
 0x18b   : > { %v544_v10 = vsel %vm529_vm3, %v418_v8, 0.0  ;;  %v420_v11 = vpop.f32.mrb[1].mxu0  ;;  %480 = vst.msk [vmem:[%s246_s14 + $0x8] sm:$0xf] %vm479_vm4, %v748_v4  ;;  %v463_v12 = vpop.f32.mrb[3].mxu1 }
 0x18c   : > { %v553_v13 = vmul.f32 %v544_v10, %v418_v8  ;;  %v747_v14 = vpack.c.bf16 %v420_v11, %v418_v8  ;;  %v545_v15 = vsel %vm530_vm5, %v420_v11, 0.0  ;;  %v422_v16 = vpop.f32.mrb[2].mxu0  ;;  %v557_v21 = vsel %vm548_vm6, %v555_v7, 0.0 }
 0x18d   : > { %v554_v18 = vmul.f32 %v545_v15, %v420_v11  ;;  %v423_v19 = vpop.f32.mrb[3].mxu0  ;;  %v547_v20 = vadd.f32 %v545_v15, %v544_v10 }
 0x18e   : > { %478 = vst [vmem:[%s246_s14] sm:$0xff] %v747_v14 }
 0x18f   : > { %v550_v22 = vadd.f32 %v549_v17, %v547_v20  ;;  %v556_v23 = vadd.f32 %v554_v18, %v553_v13 }
 0x191   : > { %551 = vadd.xlane.f32.xlu0 %v550_v22  ;;  %v558_v24 = vadd.f32 %v557_v21, %v556_v23 }
 0x193   : > { %559 = vadd.xlane.f32.xlu1 %v558_v24 }
 0x21e   : > { %v552_v26 = vpop.xlane.xlu0 %551 }
 0x21f   : > { %v569_v28 = vadd.f32 %v568_v25, %v552_v26 }
 0x220   : > { %v560_v29 = vpop.xlane.xlu1 %559 }
 0x221   : > { %571 = vst.msk [vmem:[%s904_s10] sm:$0xff] %vm565_vm9, %v569_v28  ;;  %v573_v30 = vadd.f32 %v572_v27, %v560_v29 }
 0x223   : > { %574 = vst.msk [vmem:[%s255_s21] sm:$0xff] %vm565_vm9, %v573_v30 }
 0x224 PF: > { %s15_s17 = sadd.s32 1, %s819_s17   ;;  %s952_s15 = smov %s815_s16 }
 0x225   : > { %p12_p5 = scmp.ge.s32.totalorder %s15_s17, 4   ;;  %s953_s16 = smov %s955_s18 }
 0x227   :  { %14 = sbr.rel (!%p12_p5) target bundleno = 2 (0x2), region = 86 }

</bundles_post_ra>
